<compile_context>
chip_gen: v7x
topology: tpu7x:2x2x1
jax: 0.10.0
libtpu: 0.0.40
codegen_flags: <defaults>
</compile_context>

<pallas_src>
import math
from typing import NamedTuple

import jax
import jax.numpy as jnp
from jax.experimental import pallas as pl
from jax.experimental.pallas import tpu as pltpu


_GELU_C = math.sqrt(2.0 / math.pi)  # hoisted GELU constant


def _gelu_tanh_f32(h):
    # 0.5*h*(1 + tanh(c*(h + 0.044715*h^3))) in Horner form, all f32.
    c = jnp.float32(_GELU_C)
    inner = (c * h) * (jnp.float32(1.0) + jnp.float32(0.044715) * (h * h))
    return (jnp.float32(0.5) * h) * (jnp.float32(1.0) + jnp.tanh(inner))


def _ffn_kernel_accout(x_ref, w1_ref, b1_ref, w2_ref, b2_ref, o_ref):
    """f32 output: accumulate directly into the resident output block."""
    k = pl.program_id(1)

    @pl.when(k == 0)
    def _init():
        o_ref[...] = jnp.zeros_like(o_ref)

    # First linear (this H tile): [tm, E] @ [E, th] -> f32.
    h = jnp.dot(x_ref[...], w1_ref[...],
                preferred_element_type=jnp.float32) + b1_ref[...]
    g = _gelu_tanh_f32(h)
    # Second linear partial sum: [tm, th] @ [th, E] accumulated into o_ref.
    o_ref[...] += jnp.dot(g.astype(w2_ref.dtype), w2_ref[...],
                          preferred_element_type=jnp.float32)

    @pl.when(k == pl.num_programs(1) - 1)
    def _finalize():
        o_ref[...] = o_ref[...] + b2_ref[...]


def _ffn_kernel_scratch(x_ref, w1_ref, b1_ref, w2_ref, b2_ref, o_ref, acc_ref):
    """Non-f32 output: f32 accumulator scratch, single cast at the end."""
    k = pl.program_id(1)

    @pl.when(k == 0)
    def _init():
        acc_ref[...] = jnp.zeros_like(acc_ref)

    h = jnp.dot(x_ref[...], w1_ref[...],
                preferred_element_type=jnp.float32) + b1_ref[...]
    g = _gelu_tanh_f32(h)
    acc_ref[...] += jnp.dot(g.astype(w2_ref.dtype), w2_ref[...],
                            preferred_element_type=jnp.float32)

    @pl.when(k == pl.num_programs(1) - 1)
    def _finalize():
        o_ref[...] = (acc_ref[...] + b2_ref[...]).astype(o_ref.dtype)


def _round_up(n, m):
    return (n + m - 1) // m * m


def _vmem_capacity_bytes():
    try:
        cap = int(pltpu.get_tpu_info().vmem_capacity_bytes)
        if cap > 0:
            return cap
    except Exception:
        pass
    return 64 << 20  # conservative fallback (v7x-sized VMEM)


def _pick_th(limit, Hp):
    """Largest multiple of 128 <= limit that divides Hp (Hp is a mult of 128)."""
    th = max(128, min(limit, Hp) // 128 * 128)
    while Hp % th != 0:
        th -= 128
    return th


class PreparedFFN(NamedTuple):
    w1p: jax.Array   # [Ep, Hp], compute dtype
    b1p: jax.Array   # [1, Hp], f32
    w2p: jax.Array   # [Hp, Ep], compute dtype
    b2p: jax.Array   # [1, Ep], f32
    E: int
    H: int
    Ep: int
    Hp: int


def prepare_ffn_params(w1, b1, w2, b2, *, compute_dtype=jnp.bfloat16):
    """Pad + cast the weights ONCE.  w1: [E, H], b1: [H], w2: [H, E], b2: [E]."""
    E, H = w1.shape
    Ep, Hp = _round_up(E, 128), _round_up(H, 128)
    w1p = jnp.pad(w1, ((0, Ep - E), (0, Hp - H))).astype(compute_dtype)
    w2p = jnp.pad(w2, ((0, Hp - H), (0, Ep - E))).astype(compute_dtype)
    b1p = jnp.pad(b1, (0, Hp - H)).astype(jnp.float32).reshape(1, Hp)
    b2p = jnp.pad(b2, (0, Ep - E)).astype(jnp.float32).reshape(1, Ep)
    return PreparedFFN(w1p, b1p, w2p, b2p, E, H, Ep, Hp)


def feedforward(x, params: PreparedFFN, *, tm=None, th=None):
    """x: [B, S, E] -> [B, S, E].  Linear(E,4E) -> GELU(tanh) -> Linear(4E,E)."""
    B, S, E = x.shape
    assert E == params.E, "embedding dim mismatch"
    M = B * S
    Ep, Hp = params.Ep, params.Hp
    cd = params.w1p.dtype                       # MXU operand dtype
    out_dtype = x.dtype
    cd_size = jnp.dtype(cd).itemsize
    out_size = jnp.dtype(out_dtype).itemsize
    row_mult = max(8, 32 // cd_size)            # bf16 -> 16-row native packing

    # ---- generation-aware tile / VMEM defaults ----
    vmem_cap = _vmem_capacity_bytes()
    big_vmem = vmem_cap >= (96 << 20)           # v5e / v6e: 128 MiB physical
    if big_vmem:
        tm_def, th_def, gen_limit = 512, 1024, (100 << 20)
    else:                                       # v7x-like: 64 MiB per TC
        tm_def, th_def, gen_limit = 256, 512, (52 << 20)

    tm_eff = min(tm if tm is not None else tm_def, _round_up(M, row_mult))
    tm_eff = max(row_mult, tm_eff // row_mult * row_mult)
    if not big_vmem and M > row_mult:
        # v7x has 2 TensorCores: give the "parallel" row axis >= 2 tiles.
        tm_eff = min(tm_eff, _round_up(pl.cdiv(M, 2), row_mult))
    th_eff = _pick_th(th if th is not None else th_def, Hp)

    use_scratch = jnp.dtype(out_dtype) != jnp.dtype(jnp.float32)

    def vmem_cost(tm_, th_):
        b = 2 * tm_ * Ep * cd_size              # x tile (double-buffered)
        b += 2 * Ep * th_ * cd_size             # W1 H-tile
        b += 2 * th_ * Ep * cd_size             # W2 H-tile
        b += 2 * (th_ + Ep) * 4                 # biases (f32)
        b += 2 * tm_ * Ep * out_size            # output tile
        if use_scratch:
            b += tm_ * Ep * 4                   # f32 accumulator scratch
        return b

    tile_budget = gen_limit - (4 << 20)         # headroom for Mosaic internals
    while vmem_cost(tm_eff, th_eff) > tile_budget and th_eff > 128:
        th_eff = _pick_th(th_eff // 2, Hp)
    while vmem_cost(tm_eff, th_eff) > tile_budget and tm_eff > row_mult:
        tm_eff = max(row_mult, (tm_eff // 2) // row_mult * row_mult)

    Mp = _round_up(M, tm_eff)
    grid = (Mp // tm_eff, Hp // th_eff)
    n_row_tiles = grid[0]

    # Only the activations are padded/cast per call.
    x2 = jnp.pad(x.reshape(M, E), ((0, Mp - M), (0, Ep - E))).astype(cd)

    per_step = vmem_cost(tm_eff, th_eff)
    vmem_limit = int(min(vmem_cap - (4 << 20),
                         max(gen_limit, per_step + (4 << 20))))

    cost = pl.CostEstimate(
        flops=4 * Mp * Ep * Hp,                               # two matmuls
        transcendentals=Mp * Hp,                              # tanh in GELU
        bytes_accessed=(Mp * Ep * cd_size                     # x read
                        + n_row_tiles * 2 * Ep * Hp * cd_size # W1+W2 re-streamed
                        + n_row_tiles * (Hp + Ep) * 4         # biases
                        + Mp * Ep * out_size),                # output write
    )

    in_specs = [
        pl.BlockSpec((tm_eff, Ep), lambda i, k: (i, 0)),   # x rows (resident over k)
        pl.BlockSpec((Ep, th_eff), lambda i, k: (0, k)),   # W1 H-tile
        pl.BlockSpec((1, th_eff), lambda i, k: (0, k)),    # b1 H-tile
        pl.BlockSpec((th_eff, Ep), lambda i, k: (k, 0)),   # W2 H-tile
        pl.BlockSpec((1, Ep), lambda i, k: (0, 0)),        # b2
    ]
    out_spec = pl.BlockSpec((tm_eff, Ep), lambda i, k: (i, 0))

    kernel = _ffn_kernel_scratch if use_scratch else _ffn_kernel_accout
    scratch = [pltpu.VMEM((tm_eff, Ep), jnp.float32)] if use_scratch else []

    out = pl.pallas_call(
        kernel,
        out_shape=jax.ShapeDtypeStruct((Mp, Ep), out_dtype),
        grid_spec=pltpu.PrefetchScalarGridSpec(
            num_scalar_prefetch=0,
            grid=grid,
            in_specs=in_specs,
            out_specs=out_spec,
            scratch_shapes=scratch,
        ),
        compiler_params=pltpu.CompilerParams(
            dimension_semantics=("parallel", "arbitrary"),
            vmem_limit_bytes=vmem_limit,
        ),
        cost_estimate=cost,
    )(x2, params.w1p, params.b1p, params.w2p, params.b2p)

    return out[:M, :E].reshape(B, S, E)


def xavier_uniform(key, fan_in, fan_out, dtype=jnp.float32):
    bound = math.sqrt(6.0 / (fan_in + fan_out))
    return jax.random.uniform(key, (fan_in, fan_out), dtype=dtype,
                              minval=-bound, maxval=bound)


if __name__ == "__main__":
    # config['emb_dim'] = 32; batch=2, seq=8
    emb_dim = 32
    hidden = 4 * emb_dim
    batch, seq = 2, 8

    key = jax.random.PRNGKey(0)
    kx, kw1, kw2 = jax.random.split(key, 3)

    x = jax.random.normal(kx, (batch, seq, emb_dim), dtype=jnp.float32)
    w1 = xavier_uniform(kw1, emb_dim, hidden)     # Linear(emb, 4*emb), xavier
    b1 = jnp.zeros((hidden,), dtype=jnp.float32)  # zeros init
    w2 = xavier_uniform(kw2, hidden, emb_dim)     # Linear(4*emb, emb), xavier
    b2 = jnp.zeros((emb_dim,), dtype=jnp.float32)

    # Pure-JAX reference.
    # TODO(synk): module uses a custom GELU(); tanh-approx assumed (erf variant
    # would differ at ~1e-3 relative).
    h_ref = x.reshape(-1, emb_dim) @ w1 + b1
    g_ref = 0.5 * h_ref * (1.0 + jnp.tanh(_GELU_C * (h_ref + 0.044715 * h_ref ** 3)))
    o_ref = (g_ref @ w2 + b2).reshape(batch, seq, emb_dim)

    # 1) f32 MXU operands: tight check against the f32 reference.
    params_f32 = prepare_ffn_params(w1, b1, w2, b2, compute_dtype=jnp.float32)
    out_f32 = jax.block_until_ready(feedforward(x, params_f32))
    assert out_f32.shape == o_ref.shape, "shape mismatch vs reference"
    assert jnp.allclose(out_f32, o_ref, atol=1e-5, rtol=1e-5), "f32 mismatch"

    # 2) Default bf16 MXU operands (f32 accumulation): expected quantization error.
    params_bf16 = prepare_ffn_params(w1, b1, w2, b2)  # compute_dtype=bf16
    out_bf16 = jax.block_until_ready(feedforward(x, params_bf16))
    assert out_bf16.shape == o_ref.shape, "shape mismatch vs reference (bf16)"
    assert bool(jnp.all(jnp.isfinite(out_bf16))), "non-finite bf16 output"
    assert jnp.allclose(out_bf16, o_ref, atol=5e-2, rtol=5e-2), "bf16 mismatch"

    print("KERNEL_OK")
</pallas_src>

<mosaic_0001>
module attributes {stable_mosaic.version = 11 : i64} {
  func.func @_ffn_kernel_accout(%arg0: i32, %arg1: i32, %arg2: memref<8x128xf32, #tpu.memory_space<vmem>>, %arg3: memref<128x128xf32, #tpu.memory_space<vmem>>, %arg4: memref<1x128xf32, #tpu.memory_space<vmem>>, %arg5: memref<128x128xf32, #tpu.memory_space<vmem>>, %arg6: memref<1x128xf32, #tpu.memory_space<vmem>>, %arg7: memref<8x128xf32, #tpu.memory_space<vmem>>) attributes {dimension_semantics = [#tpu.dimension_semantics<parallel>, #tpu.dimension_semantics<arbitrary>], iteration_bounds = array<i64: 2, 1>, scalar_prefetch = 0 : i64, scratch_operands = 0 : i64, tpu.core_type = #tpu.core_type<tc>, window_params = [{transform_indices = @transform_0, window_bounds = array<i64: 8, 128>}, {transform_indices = @transform_1, window_bounds = array<i64: 128, 128>}, {transform_indices = @transform_2, window_bounds = array<i64: 1, 128>}, {transform_indices = @transform_3, window_bounds = array<i64: 128, 128>}, {pipeline_mode = #tpu.pipeline_mode<synchronous>, transform_indices = @transform_4, window_bounds = array<i64: 1, 128>}, {transform_indices = @transform_5, window_bounds = array<i64: 8, 128>}]} {
    %c0_i32 = arith.constant 0 : i32
    %0 = arith.cmpi eq, %arg1, %c0_i32 : i32
    %1 = arith.extui %0 : i1 to i32
    %c0_i32_0 = arith.constant 0 : i32
    %2 = arith.cmpi ne, %1, %c0_i32_0 : i32
    scf.if %2 {
      %cst_20 = arith.constant 0.000000e+00 : f32
      %31 = vector.broadcast %cst_20 : f32 to vector<8x128xf32>
      %c0_21 = arith.constant 0 : index
      %c0_22 = arith.constant 0 : index
      %32 = vector.load %arg7[%c0_21, %c0_22] : memref<8x128xf32, #tpu.memory_space<vmem>>, vector<8x128xf32>
      tpu.vector_store %arg7[%c0_21, %c0_22], %31 {strides = array<i32>} : memref<8x128xf32, #tpu.memory_space<vmem>>, vector<8x128xf32>,
    } else {
    }
    %c0 = arith.constant 0 : index
    %c0_1 = arith.constant 0 : index
    %3 = vector.load %arg2[%c0, %c0_1] : memref<8x128xf32, #tpu.memory_space<vmem>>, vector<8x128xf32>
    %c0_2 = arith.constant 0 : index
    %c0_3 = arith.constant 0 : index
    %4 = vector.load %arg3[%c0_2, %c0_3] : memref<128x128xf32, #tpu.memory_space<vmem>>, vector<128x128xf32>
    %cst = arith.constant dense<0.000000e+00> : vector<8x128xf32>
    %5 = tpu.matmul %3, %4, %cst {dimension_numbers = #tpu.dot_dimension_numbers<[1], [0], [0], [1], [0, 0, 1, 1], [], []>} : vector<8x128xf32>, vector<128x128xf32>, vector<8x128xf32> -> vector<8x128xf32>
    %c0_4 = arith.constant 0 : index
    %c0_5 = arith.constant 0 : index
    %6 = vector.load %arg4[%c0_4, %c0_5] : memref<1x128xf32, #tpu.memory_space<vmem>>, vector<1x128xf32>
    %7 = vector.broadcast %6 : vector<1x128xf32> to vector<8x128xf32>
    %8 = arith.addf %5, %7 : vector<8x128xf32>
    %cst_6 = arith.constant 0.797884583 : f32
    %9 = vector.broadcast %cst_6 : f32 to vector<8x128xf32>
    %10 = arith.mulf %9, %8 : vector<8x128xf32>
    %11 = arith.mulf %8, %8 : vector<8x128xf32>
    %cst_7 = arith.constant 4.471500e-02 : f32
    %12 = vector.broadcast %cst_7 : f32 to vector<8x128xf32>
    %13 = arith.mulf %12, %11 : vector<8x128xf32>
    %cst_8 = arith.constant 1.000000e+00 : f32
    %14 = vector.broadcast %cst_8 : f32 to vector<8x128xf32>
    %15 = arith.addf %14, %13 : vector<8x128xf32>
    %16 = arith.mulf %10, %15 : vector<8x128xf32>
    %cst_9 = arith.constant 5.000000e-01 : f32
    %17 = vector.broadcast %cst_9 : f32 to vector<8x128xf32>
    %18 = arith.mulf %17, %8 : vector<8x128xf32>
    %19 = math.tanh %16 : vector<8x128xf32>
    %cst_10 = arith.constant 1.000000e+00 : f32
    %20 = vector.broadcast %cst_10 : f32 to vector<8x128xf32>
    %21 = arith.addf %20, %19 : vector<8x128xf32>
    %22 = arith.mulf %18, %21 : vector<8x128xf32>
    %c0_11 = arith.constant 0 : index
    %c0_12 = arith.constant 0 : index
    %23 = vector.load %arg7[%c0_11, %c0_12] : memref<8x128xf32, #tpu.memory_space<vmem>>, vector<8x128xf32>
    %c0_13 = arith.constant 0 : index
    %c0_14 = arith.constant 0 : index
    %24 = vector.load %arg5[%c0_13, %c0_14] : memref<128x128xf32, #tpu.memory_space<vmem>>, vector<128x128xf32>
    %cst_15 = arith.constant dense<0.000000e+00> : vector<8x128xf32>
    %25 = tpu.matmul %22, %24, %cst_15 {dimension_numbers = #tpu.dot_dimension_numbers<[1], [0], [0], [1], [0, 0, 1, 1], [], []>} : vector<8x128xf32>, vector<128x128xf32>, vector<8x128xf32> -> vector<8x128xf32>
    %26 = arith.addf %23, %25 : vector<8x128xf32>
    %c0_16 = arith.constant 0 : index
    %c0_17 = arith.constant 0 : index
    %27 = vector.load %arg7[%c0_16, %c0_17] : memref<8x128xf32, #tpu.memory_space<vmem>>, vector<8x128xf32>
    tpu.vector_store %arg7[%c0_16, %c0_17], %26 {strides = array<i32>} : memref<8x128xf32, #tpu.memory_space<vmem>>, vector<8x128xf32>,
    %c0_i32_18 = arith.constant 0 : i32
    %28 = arith.cmpi eq, %arg1, %c0_i32_18 : i32
    %29 = arith.extui %28 : i1 to i32
    %c0_i32_19 = arith.constant 0 : i32
    %30 = arith.cmpi ne, %29, %c0_i32_19 : i32
    scf.if %30 {
      %c0_20 = arith.constant 0 : index
      %c0_21 = arith.constant 0 : index
      %31 = vector.load %arg7[%c0_20, %c0_21] : memref<8x128xf32, #tpu.memory_space<vmem>>, vector<8x128xf32>
      %c0_22 = arith.constant 0 : index
      %c0_23 = arith.constant 0 : index
      %32 = vector.load %arg6[%c0_22, %c0_23] : memref<1x128xf32, #tpu.memory_space<vmem>>, vector<1x128xf32>
      %33 = vector.broadcast %32 : vector<1x128xf32> to vector<8x128xf32>
      %34 = arith.addf %31, %33 : vector<8x128xf32>
      %c0_24 = arith.constant 0 : index
      %c0_25 = arith.constant 0 : index
      %35 = vector.load %arg7[%c0_24, %c0_25] : memref<8x128xf32, #tpu.memory_space<vmem>>, vector<8x128xf32>
      tpu.vector_store %arg7[%c0_24, %c0_25], %34 {strides = array<i32>} : memref<8x128xf32, #tpu.memory_space<vmem>>, vector<8x128xf32>,
    } else {
    }
    return
  }
  func.func @transform_0(%arg0: i32, %arg1: i32) -> (i32, i32) {
    %c0_i32 = arith.constant 0 : i32
    %c0_i32_0 = arith.constant 0 : i32
    return %arg0, %c0_i32 : i32, i32
  }
  func.func @transform_1(%arg0: i32, %arg1: i32) -> (i32, i32) {
    %c0_i32 = arith.constant 0 : i32
    %c0_i32_0 = arith.constant 0 : i32
    return %c0_i32, %arg1 : i32, i32
  }
  func.func @transform_2(%arg0: i32, %arg1: i32) -> (i32, i32) {
    %c0_i32 = arith.constant 0 : i32
    %c0_i32_0 = arith.constant 0 : i32
    return %c0_i32, %arg1 : i32, i32
  }
  func.func @transform_3(%arg0: i32, %arg1: i32) -> (i32, i32) {
    %c0_i32 = arith.constant 0 : i32
    %c0_i32_0 = arith.constant 0 : i32
    return %arg1, %c0_i32 : i32, i32
  }
  func.func @transform_4(%arg0: i32, %arg1: i32) -> (i32, i32) {
    %c0_i32 = arith.constant 0 : i32
    %c0_i32_0 = arith.constant 0 : i32
    %c0_i32_1 = arith.constant 0 : i32
    return %c0_i32, %c0_i32_0 : i32, i32
  }
  func.func @transform_5(%arg0: i32, %arg1: i32) -> (i32, i32) {
    %c0_i32 = arith.constant 0 : i32
    %c0_i32_0 = arith.constant 0 : i32
    return %arg0, %c0_i32 : i32, i32
  }
}

</mosaic_0001>

<bundles_post_ra>
// kernel: tpu_custom_call.1
= control target key start
LH: loop header
LB: loop body
LE: loop exit
PB: predicated region body
PF: predicated region fallthrough
CT: control target
= control target key end

     0   :  { %10 = vsyncpa [#allocation3], 0  ;;  %s1402_s0 = inlined_call_operand.hbm [shape: f32[16,128], index: 0, kind: input, shape index: {}]   ;;  %s1403_s1 = inlined_call_operand.hbm [shape: f32[128,128], index: 1, kind: input, shape index: {}]   ;;  %s1404_s2 = inlined_call_operand.vmem [shape: f32[1,128], index: 2, kind: input, shape index: {}]   ;;  %s1405_s3 = inlined_call_operand.hbm [shape: f32[128,128], index: 3, kind: input, shape index: {}]   ;;  %s1406_s4 = inlined_call_operand.vmem [shape: f32[1,128], index: 4, kind: input, shape index: {}]   ;;  %s1407_s5 = inlined_call_operand.hbm [shape: f32[16,128], index: 5, kind: output, shape index: {}]  }
   0x1   :  { %12 = vsyncpa [#allocation3 + $0x1], 0 }
   0x2   :  { %13 = vsyncpa [#allocation6], 0 }
   0x3   :  { %14 = vsyncpa [#allocation4], 0 }
   0x4   :  { %16 = vsyncpa [#allocation4 + $0x1], 0  ;;  %s1123_s18 = smov 0   ;;  %s1125_s19 = smov 0  }
   0x5   :  { %s1127_s20 = smov 0   ;;  %s1129_s21 = smov 0  }
   0x6   :  { %s1131_s22 = smov 0   ;;  %s1133_s23 = smov 0  }
   0x7 LB: > { %s648_s24 = sadd.s32 4294967295, %s1082_s23   ;;  %s649_s25 = sadd.s32 4294967294, %s1082_s23   ;;  %s1082_s23 = sphi %s1133_s23, %s22_s23   ;;  %s1078_s22 = sphi %s1131_s22, %s1429_s22   ;;  %s1074_s21 = sphi %s1129_s21, %s1428_s21   ;;  %s1070_s20 = sphi %s1127_s20, %s1427_s20   ;;  %s1066_s19 = sphi %s1125_s19, %s1426_s19   ;;  %s1062_s18 = sphi %s1123_s18, %s1425_s18  }
   0x8   : > { %p54_p0 = scmp.ne.s32.totalorder %s1066_s19, %s1062_s18  ;;  %p1157_p1 = scmp.eq.s32.totalorder %s648_s24, 0 }
   0x9   : > { %p1161_p2 = scmp.eq.s32.totalorder %s648_s24, 1  ;;  %p183_p3 = scmp.eq.s32.totalorder %s649_s25, 1 }
   0xa   : > { %s1412_s26 = scalar_select %p1157_p1, 1, 0 }
   0xb   : > { %p1167_p4 = por %p1157_p1, %p54_p0  ;;  %p650_p5 = scmp.ge.s32.totalorder %s1082_s23, 1 }
   0xc   : > { %p1172_p6 = por %p183_p3, %p54_p0  ;;  %p190_p7 = scmp.lt.s32.totalorder %s1082_s23, 3 }
   0xd   : > { %s1414_s28 = scalar_select %p1167_p4, 1, 0 }
   0xe   : > { %s1415_s29 = scalar_select %p1172_p6, 1, 0 }
   0xf   : > { %p1177_p8 = pnand %p650_p5, %p190_p7  ;;  %s1084_s6 = smov [#allocation5]  }
  0x10   : > { %s204_s7 = sshll.u32 %s1084_s6, 4  ;;  %s1085_s9 = smov [#allocation7]   ;;  %s1181_s7 = int_to_ptr.vmem [resolvable:$true] %s204_s7 }
  0x11   : > { %p832_p9 = pneg %p1177_p8  ;;  %s226_s10 = sshll.u32 %s1085_s9, 4  ;;  %s1192_s10 = int_to_ptr.vmem [resolvable:$true] %s226_s10 }
  0x12   : > { %s910_s13 = scalar_lea.hbm %s1403_s1, 2048 }
  0x13   : > { %p1188_p11 = pnand %p832_p9, %p1157_p1  ;;  %p911_p12 = scmp.ne.s32.totalorder %s1403_s1, %s910_s13 }
  0x14   : > { %p917_p5 = scmp.lt.u32.totalorder %s910_s13, %s1403_s1 }
  0x15   : > { %p912_p13 = pneg %p1188_p11 }
  0x17   : > { %p913_p0 = pnand %p912_p13, %p911_p12 }
  0x19   : > { %p914_p3 = pneg %p913_p0 }
  0x1b   : > { %p919_p7 = pnand %p917_p5, %p914_p3 }
  0x1d   : > { %922 = shalt.err (!%p919_p7)
}
  0x1e   : > { %s923_s24 = scalar_lea.vmem %s1181_s7, 2048  ;;  %p931_p1 = scmp.lt.s32.totalorder %s1181_s7, %s1181_s7 }
  0x1f   : > { %p924_p9 = scmp.ne.s32.totalorder %s1181_s7, %s923_s24  ;;  %p932_p12 = scmp.lt.s32.totalorder %s923_s24, %s923_s24 }
  0x21   : > { %p926_p10 = pnand %p924_p9, %p912_p13  ;;  %p933_p0 = por %p932_p12, %p931_p1 }
  0x23   : > { %p927_p6 = pneg %p926_p10 }
  0x25   : > { %p934_p4 = pnand %p933_p0, %p927_p6 }
  0x27   : > { %937 = shalt.err (!%p934_p4)
}
  0x28   : > { %s1086_s25 = smov 128   ;;  %s1087_s6 = smov 8  }
  0x29   : > { %835 = dma.hbm_to_vmem [thread:$0]  (!%p1188_p11), %s1403_s1, 2048, %s1181_s7, [#allocation6], %s1086_s25, %s1086_s25, %s1087_s6  }
  0x2a   : > { %s938_s14 = scalar_lea.hbm %s1405_s3, 2048 }
  0x2b   : > { %p939_p1 = scmp.ne.s32.totalorder %s1405_s3, %s938_s14  ;;  %p945_p10 = scmp.lt.u32.totalorder %s938_s14, %s1405_s3 }
  0x2d   : > { %p941_p4 = pnand %p939_p1, %p912_p13 }
  0x2f   : > { %p942_p6 = pneg %p941_p4 }
  0x31   : > { %p947_p3 = pnand %p945_p10, %p942_p6 }
  0x33   : > { %950 = shalt.err (!%p947_p3)
}
  0x34   : > { %s951_s7 = scalar_lea.vmem %s1192_s10, 2048  ;;  %p959_p12 = scmp.lt.s32.totalorder %s1192_s10, %s1192_s10 }
  0x35   : > { %p952_p5 = scmp.ne.s32.totalorder %s1192_s10, %s951_s7  ;;  %p960_p0 = scmp.lt.s32.totalorder %s951_s7, %s951_s7 }
  0x37   : > { %p954_p7 = pnand %p952_p5, %p912_p13  ;;  %p961_p1 = por %p960_p0, %p959_p12 }
  0x39   : > { %p955_p9 = pneg %p954_p7 }
  0x3b   : > { %p962_p4 = pnand %p961_p1, %p955_p9 }
  0x3d   : > { %965 = shalt.err (!%p962_p4)
}
  0x3e   : > { %838 = dma.hbm_to_vmem [thread:$0]  (!%p1188_p11), %s1405_s3, 2048, %s1192_s10, [#allocation6], %s1086_s25, %s1086_s25, %s1087_s6  }
  0x3f   : > { %s34_s12 = sadd.s32 1, %s1078_s22  ;;  %s41_s13 = sadd.s32 1, %s1070_s20 }
  0x40   : > { %p36_p13 = scmp.ge.s32.totalorder %s34_s12, 2  ;;  %p48_p6 = scmp.ne.s32.totalorder %s1070_s20, %s1066_s19 }
  0x41   : > { %p49_p10 = scmp.eq.s32.totalorder %s1082_s23, 0  ;;  %p849_p3 = scmp.lt.s32.totalorder %s1082_s23, 2 }
  0x42   : > { %s1431_s12 = smov (%p36_p13, %s34_s12), 0  ;;  %p1256_p7 = por %p1161_p2, %p48_p6 }
  0x43   : > { %p50_p5 = por %p49_p10, %p48_p6  ;;  %s38_s14 = ssub.s32 %s1078_s22, %s1431_s12 }
  0x44   : > { %s1418_s8 = scalar_select %p1256_p7, 1, 0 }
  0x45   : > { %s243_s15 = sand.u32 1, %s1070_s20   ;;  %p39_p9 = scmp.eq.s32.totalorder %s38_s14, 0 }
  0x46   : > { %s655_s10 = sshll.u32 %s243_s15, 3  ;;  %s656_s25 = sshll.u32 %s1078_s22, 7 }
  0x47   : > { %s1265_s6 = scalar_select %p39_p9, %s1070_s20, %s41_s13  }
  0x48   : > { %s1270_s24 = scalar_lea.hbm %s1402_s0, %s656_s25  ;;  %s247_s27 = scalar_lea.vmem [#allocation2], %s655_s10 }
  0x49   : > { %s254_s7 = sshll.u32 %s247_s27, 4  ;;  %p1274_p2 = pnand %p849_p3, %p50_p5  ;;  %s1278_s7 = int_to_ptr.vmem [resolvable:$true] %s254_s7 }
  0x4a   : > { %s244_s11 = scalar_lea.sflag [#allocation3], %s243_s15  ;;  %s966_s13 = scalar_lea.hbm %s1270_s24, 128 }
  0x4b   : > { %p967_p11 = scmp.ne.s32.totalorder %s1270_s24, %s966_s13  ;;  %p968_p12 = pneg %p1274_p2 }
  0x4c   : > { %s971_s25 = scalar_lea.hbm %s1402_s0, 256  ;;  %p972_p4 = scmp.lt.u32.totalorder %s1270_s24, %s1402_s0 }
  0x4d   : > { %p969_p0 = pnand %p968_p12, %p967_p11  ;;  %p973_p13 = scmp.lt.u32.totalorder %s971_s25, %s966_s13 }
  0x4e   : > { %p975_p10 = scmp.lt.u32.totalorder %s966_s13, %s1270_s24 }
  0x4f   : > { %p970_p1 = pneg %p969_p0  ;;  %p974_p6 = por %p973_p13, %p972_p4 }
  0x51   : > { %p976_p3 = por %p975_p10, %p974_p6 }
  0x53   : > { %p977_p5 = pnand %p976_p3, %p970_p1 }
  0x55   : > { %980 = shalt.err (!%p977_p5)
}
  0x56   : > { %s981_s15 = scalar_lea.vmem %s1278_s7, 128  ;;  %s1088_s27 = smov [#allocation2]  }
  0x57   : > { %p982_p9 = scmp.ne.s32.totalorder %s1278_s7, %s981_s15  ;;  %s986_s14 = sshll.u32 %s1088_s27, 4  ;;  %s987_s14 = int_to_ptr.vmem [resolvable:$false] %s986_s14 }
  0x58   : > { %s988_s10 = scalar_lea.vmem %s987_s14, 256  ;;  %p989_p7 = scmp.lt.s32.totalorder %s1278_s7, %s987_s14 }
  0x59   : > { %p984_p11 = pnand %p982_p9, %p968_p12  ;;  %p990_p4 = scmp.lt.s32.totalorder %s988_s10, %s981_s15 }
  0x5b   : > { %p985_p0 = pneg %p984_p11  ;;  %p991_p13 = por %p990_p4, %p989_p7 }
  0x5d   : > { %p992_p6 = pnand %p991_p13, %p985_p0 }
  0x5f   : > { %995 = shalt.err (!%p992_p6)
}
  0x60   : > { %842 = dma.hbm_to_vmem [thread:$0]  (!%p1274_p2), %s1270_s24, 128, %s1278_s7, %s244_s11  }
  0x61   : > { %263 = sbr.rel (%p1177_p8) target bundleno = 608 (0x260), region = 40  ;;  %s1308_s13 = sand.u32 (!%p1177_p8), 1, %s1066_s19  }
  0x62   : > { %s658_s25 = sshll.u32 (!%p1177_p8), %s1308_s13, 3  ;;  %s266_s16 = scalar_lea.sflag (!%p1177_p8), [#allocation3], %s1308_s13 }
  0x63   : > { %s1314_s17 = scalar_lea.vmem (!%p1177_p8), [#allocation2], %s658_s25  ;;  %p1420_p7 = scmp.ne.s32.totalorder (!%p1177_p8), %s1414_s28, 0 }
  0x68   : > { %1049 = dma.done.wait (%p1420_p7), %s266_s16, 128  }
  0x69   : > { %1051 = vsyncadd (%p1420_p7), %s266_s16, 4294967168  ;;  %p1421_p2 = scmp.ne.s32.totalorder %s1412_s26, 0 }
  0x6b   : > { %1053 = dma.done.wait (%p1421_p2), [#allocation6], 4096  }
  0x6c   : > { %1055 = vsyncadd (%p1421_p2), [#allocation6], 4294963200  ;;  %v1089_v0 = vmov 0.0|0.0   ;;  %vm1090_vm0 = vmmov 0   ;;  %v1091_v1 = vmov 0.0   ;;  %v317_v2 = vld [vmem:[#allocation5] sm:$0xff] }
  0x6d   : > { %772 = vmatprep.subr.bf16.mxu0 %v1089_v0  ;;  %734 = vmatprep.mubr.msk.f32.mxu0 %vm1090_vm0, %v1091_v1  ;;  %v318_v3 = vld [vmem:[#allocation5 + $0x8] sm:$0xff]  ;;  %v319_v4 = vld [vmem:[#allocation5 + $0x10] sm:$0xff]  ;;  %v320_v6 = vld [vmem:[#allocation5 + $0x18] sm:$0xff]  ;;  %s665_s7 = sshll.u32 %s1074_s21, 7  ;;  %s306_s9 = scalar_lea.vmem [#allocation8], %s658_s25 }
  0x6e   : > { %796 = vmatprep.subr.bf16.mxu1 %v1089_v0  ;;  %769 = vmatprep.mubr.msk.f32.mxu1 %vm1090_vm0, %v1091_v1  ;;  %v773_v5 = vpack.c.bf16 %v318_v3, %v317_v2  ;;  %v776_v7 = vpack.c.bf16 %v320_v6, %v319_v4  ;;  %v321_v8 = vld [vmem:[#allocation5 + $0x20] sm:$0xff]  ;;  %v322_v9 = vld [vmem:[#allocation5 + $0x28] sm:$0xff]  ;;  %v422_v12 = vld [vmem:[#allocation7 + $0x10] sm:$0xff]  ;;  %s535_s11 = sshll.u32 %s306_s9, 4  ;;  %s1353_s14 = scalar_lea.hbm %s1407_s5, %s665_s7  ;;  %s1355_s11 = int_to_ptr.vmem [resolvable:$true] %s535_s11 }
  0x6f   : > { %v420_v10 = vld [vmem:[#allocation7] sm:$0xff]  ;;  %v421_v11 = vld [vmem:[#allocation7 + $0x8] sm:$0xff]  ;;  %v423_v13 = vld [vmem:[#allocation7 + $0x18] sm:$0xff]  ;;  %v779_v14 = vpack.c.bf16 %v322_v9, %v321_v8  ;;  %s522_s10 = scalar_lea.sflag [#allocation4], %s1308_s13  ;;  %s996_s16 = scalar_lea.vmem %s1355_s11, 128 }
  0x70   : > { %774 = vmatpush3.bf16.msra.mxu0 %v773_v5  ;;  %v797_v15 = vpack.c.bf16 %v421_v11, %v420_v10  ;;  %v323_v16 = vld [vmem:[#allocation5 + $0x30] sm:$0xff]  ;;  %v324_v17 = vld [vmem:[#allocation5 + $0x38] sm:$0xff]  ;;  %v800_v18 = vpack.c.bf16 %v423_v13, %v422_v12  ;;  %v325_v20 = vld [vmem:[#allocation5 + $0x40] sm:$0xff]  ;;  %p997_p8 = scmp.ne.s32.totalorder %s1355_s11, %s996_s16  ;;  %p1422_p12 = scmp.ne.s32.totalorder %s1418_s8, 0 }
  0x71   : > { %775 = vmatprep.subr.bf16.mxu0 %v1089_v0  ;;  %v782_v19 = vpack.c.bf16 %v324_v17, %v323_v16  ;;  %v326_v21 = vld [vmem:[#allocation5 + $0x48] sm:$0xff]  ;;  %v327_v23 = vld [vmem:[#allocation5 + $0x50] sm:$0xff]  ;;  %v328_v24 = vld [vmem:[#allocation5 + $0x58] sm:$0xff]  ;;  %s1092_s21 = smov [#allocation8]  }
  0x72   : > { %798 = vmatpush3.bf16.msra.mxu1 %v797_v15  ;;  %v785_v22 = vpack.c.bf16 %v326_v21, %v325_v20  ;;  %v788_v25 = vpack.c.bf16 %v328_v24, %v327_v23  ;;  %v329_v26 = vld [vmem:[#allocation5 + $0x60] sm:$0xff]  ;;  %v330_v27 = vld [vmem:[#allocation5 + $0x68] sm:$0xff]  ;;  %v331_v29 = vld [vmem:[#allocation5 + $0x70] sm:$0xff]  ;;  %p998_p1 = pnand %p997_p8, %p1422_p12  ;;  %s1000_s25 = sshll.u32 %s1092_s21, 4  ;;  %s1001_s25 = int_to_ptr.vmem [resolvable:$false] %s1000_s25 }
  0x73   : > { %799 = vmatprep.subr.bf16.mxu1 %v1089_v0  ;;  %v791_v28 = vpack.c.bf16 %v330_v27, %v329_v26  ;;  %v332_v30 = vld [vmem:[#allocation5 + $0x78] sm:$0xff]  ;;  %v424_v33 = vld [vmem:[#allocation7 + $0x20] sm:$0xff]  ;;  %v425_v34 = vld [vmem:[#allocation7 + $0x28] sm:$0xff]  ;;  %p1003_p3 = scmp.lt.s32.totalorder %s1355_s11, %s1001_s25 }
  0x74   : > { %777 = vmatpush3.bf16.msra.mxu0 %v776_v7  ;;  %v794_v31 = vpack.c.bf16 %v332_v30, %v331_v29  ;;  %v316_v32 = vld [vmem:[%s1314_s17] sm:$0xff]  ;;  %v803_v35 = vpack.c.bf16 %v425_v34, %v424_v33  ;;  %v428_v39 = vld [vmem:[#allocation7 + $0x40] sm:$0xff]  ;;  %v429_v40 = vld [vmem:[#allocation7 + $0x48] sm:$0xff]  ;;  %p999_p10 = pneg %p998_p1  ;;  %s1002_s17 = scalar_lea.vmem %s1001_s25, 256 }
  0x75   : > { %778 = vmatprep.subr.bf16.mxu0 %v1089_v0  ;;  %v426_v36 = vld [vmem:[#allocation7 + $0x30] sm:$0xff]  ;;  %v427_v37 = vld [vmem:[#allocation7 + $0x38] sm:$0xff]  ;;  %v809_v41 = vpack.c.bf16 %v429_v40, %v428_v39  ;;  %v432_v45 = vld [vmem:[#allocation7 + $0x60] sm:$0xff]  ;;  %p1004_p5 = scmp.lt.s32.totalorder %s1002_s17, %s996_s16 }
  0x76   : > { %801 = vmatpush3.bf16.msra.mxu1 %v800_v18  ;;  %v806_v38 = vpack.c.bf16 %v427_v37, %v426_v36  ;;  %v430_v42 = vld [vmem:[#allocation7 + $0x50] sm:$0xff]  ;;  %v431_v43 = vld [vmem:[#allocation7 + $0x58] sm:$0xff]  ;;  %v433_v46 = vld [vmem:[#allocation7 + $0x68] sm:$0xff] }
  0x77   : > { %802 = vmatprep.subr.bf16.mxu1 %v1089_v0  ;;  %v812_v44 = vpack.c.bf16 %v431_v43, %v430_v42  ;;  %v815_v47 = vpack.c.bf16 %v433_v46, %v432_v45  ;;  %v434_v48 = vld [vmem:[#allocation7 + $0x70] sm:$0xff]  ;;  %v435_v49 = vld [vmem:[#allocation7 + $0x78] sm:$0xff]  ;;  %p1005_p9 = por %p1004_p5, %p1003_p3 }
  0x78   : > { %780 = vmatpush3.bf16.msra.mxu0 %v779_v14  ;;  %v818_v50 = vpack.c.bf16 %v435_v49, %v434_v48  ;;  %v662_v51 = vld [vmem:[%s1404_s2] ss:$0 sm:$0xff] }
  0x79   : > { %781 = vmatprep.subr.bf16.mxu0 %v1089_v0  ;;  %v663_v1 = vld [vmem:[%s1406_s4] ss:$0 sm:$0xff]  ;;  %p1006_p11 = pnand %p1005_p9, %p999_p10 }
  0x7a   : > { %804 = vmatpush3.bf16.msra.mxu1 %v803_v35 }
  0x7b   : > { %805 = vmatprep.subr.bf16.mxu1 %v1089_v0 }
  0x7c   : > { %783 = vmatpush3.bf16.msra.mxu0 %v782_v19 }
  0x7d   : > { %784 = vmatprep.subr.bf16.mxu0 %v1089_v0 }
  0x7e   : > { %807 = vmatpush3.bf16.msra.mxu1 %v806_v38 }
  0x7f   : > { %808 = vmatprep.subr.bf16.mxu1 %v1089_v0 }
  0x80   : > { %786 = vmatpush3.bf16.msra.mxu0 %v785_v22 }
  0x81   : > { %787 = vmatprep.subr.bf16.mxu0 %v1089_v0 }
  0x82   : > { %810 = vmatpush3.bf16.msra.mxu1 %v809_v41 }
  0x83   : > { %811 = vmatprep.subr.bf16.mxu1 %v1089_v0 }
  0x84   : > { %789 = vmatpush3.bf16.msra.mxu0 %v788_v25 }
  0x85   : > { %790 = vmatprep.subr.bf16.mxu0 %v1089_v0 }
  0x86   : > { %813 = vmatpush3.bf16.msra.mxu1 %v812_v44 }
  0x87   : > { %814 = vmatprep.subr.bf16.mxu1 %v1089_v0 }
  0x88   : > { %792 = vmatpush3.bf16.msra.mxu0 %v791_v28 }
  0x89   : > { %793 = vmatprep.subr.bf16.mxu0 %v1089_v0 }
  0x8a   : > { %816 = vmatpush3.bf16.msra.mxu1 %v815_v47 }
  0x8b   : > { %817 = vmatprep.subr.bf16.mxu1 %v1089_v0 }
  0x8c   : > { %795 = vmatpush3.bf16.msra.mxu0 %v794_v31 }
  0x8e   : > { %819 = vmatpush3.bf16.msra.mxu1 %v818_v50 }
  0x8f   : > { %735 = vmatmul.mubr.f32.vlgmr.msra.gmra.mrb[0].mxu0 %v316_v32 }
 0x162   : > { %v406_v52 = vpop.f32.mrb[0].mxu0 }
 0x163   : > { %v407_v53 = vadd.f32 %v662_v51, %v406_v52  ;;  %v736_v54 = vpop.f32.mrb[1].mxu0 }
 0x165   : > { %v411_v55 = vmul.f32 %v407_v53, %v407_v53  ;;  %v410_v57 = vmul.f32 0.7978846, %v407_v53  ;;  %v415_v61 = vmul.f32 0.5, %v407_v53 }
 0x167   : > { %v412_v56 = vmul.f32 0.044715, %v411_v55 }
 0x169   : > { %v413_v58 = vadd.f32 1.0, %v412_v56 }
 0x16b   : > { %v414_v59 = vmul.f32 %v413_v58, %v410_v57 }
 0x16d   : > { %908 = vtanh.f32 %v414_v59 }
 0x177   : > { %v909_v60 = vpop.eup %908 }
 0x178   : > { %v417_v62 = vadd.f32 1.0, %v909_v60 }
 0x17a   : > { %v418_v63 = vmul.f32 %v417_v62, %v415_v61 }
 0x17c   : > { %770 = vmatmul.mubr.f32.vlgmr.msra.gmra.mrb[0].mxu1 %v418_v63 }
 0x24f   : > { %v502_v0 = vpop.f32.mrb[0].mxu1 }
 0x250   : > { %v771_v2 = vpop.f32.mrb[1].mxu1  ;;  %v519_v3 = vadd.f32 %v663_v1, %v502_v0 }
 0x252   : > { %520 = vst [vmem:[%s306_s9] sm:$0xff] %v519_v3 }
 0x253   : > { %1009 = shalt.err (!%p1006_p11)
}
 0x254   : > { %s1010_s13 = scalar_lea.hbm %s1353_s14, 128  ;;  %s1014_s30 = scalar_lea.hbm %s1407_s5, 256 }
 0x255   : > { %p1011_p0 = scmp.ne.s32.totalorder %s1353_s14, %s1010_s13  ;;  %p1015_p6 = scmp.lt.u32.totalorder %s1353_s14, %s1407_s5 }
 0x256   : > { %p1016_p7 = scmp.lt.u32.totalorder %s1014_s30, %s1010_s13  ;;  %p1018_p8 = scmp.lt.u32.totalorder %s1010_s13, %s1353_s14 }
 0x257   : > { %p1012_p4 = pnand %p1011_p0, %p1422_p12 }
 0x258   : > { %p1017_p2 = por %p1016_p7, %p1015_p6 }
 0x259   : > { %p1013_p13 = pneg %p1012_p4 }
 0x25a   : > { %p1019_p1 = por %p1018_p8, %p1017_p2 }
 0x25c   : > { %p1020_p10 = pnand %p1019_p1, %p1013_p13 }
 0x25e   : > { %1023 = shalt.err (!%p1020_p10)
}
 0x25f   : > { %830 = dma.vmem_to_hbm [thread:$0]  (%p1422_p12), %s1355_s11, 128, %s1353_s14, %s522_s10  }
 0x260 PF: > { %s547_s9 = sand.u32 1, %s1062_s18   ;;  %p1423_p3 = scmp.ne.s32.totalorder %s1415_s29, 0 }
 0x261   : > { %p1424_p5 = scmp.ge.s32.totalorder %s1082_s23, 2  ;;  %s548_s15 = scalar_lea.sflag [#allocation4], %s547_s9 }
 0x263   : > { %p844_p9 = pnand %p1424_p5, %p1423_p3 }
 0x265   : > { %1057 = dma.done.wait (!%p844_p9), %s548_s15, 128  }
 0x266   : > { %1059 = vsyncadd (!%p844_p9), %s548_s15, 4294967168  ;;  %s22_s23 = sadd.s32 1, %s1082_s23   ;;  %s1425_s18 = smov %s1066_s19 }
 0x267   : > { %p19_p11 = scmp.ge.s32.totalorder %s22_s23, 4   ;;  %s1426_s19 = smov %s1070_s20 }
 0x268   : > { %s1427_s20 = smov %s1265_s6  ;;  %s1428_s21 = smov %s1078_s22 }
 0x269   : > { %s1429_s22 = smov %s1431_s12  ;;  %21 = sbr.rel (!%p19_p11) target bundleno = 7 (0x7), region = 106 }
 0x270   :  { %553 = vsyncpa [#allocation3], 1 }
 0x271   :  { %555 = vsyncpa [#allocation3 + $0x1], 1 }
 0x272   :  { %556 = vsyncpa [#allocation6], 1 }
 0x273   :  { %557 = vsyncpa [#allocation4], 1 }
 0x274   :  { %559 = vsyncpa [#allocation4 + $0x1], 1 }

</bundles_post_ra>
